<compile_context>
chip_gen: v5e
topology: v5e:2x2
jax: 0.10.0
libtpu: 0.0.40
codegen_flags: <defaults>
</compile_context>

<pallas_src>
import math

import jax
import jax.numpy as jnp
from jax import lax
from jax.experimental import pallas as pl
from jax.experimental.pallas import tpu as pltpu


# ---------------------------------------------------------------------------
# Kernel: whole decoder forward for one (B_TILE, latent) batch tile.
# ---------------------------------------------------------------------------
def _decoder_kernel(z_ref, w1_ref, c1_ref, w2_ref, c2_ref, out_ref):
    f32 = jnp.float32
    # fc Linear + ConvTranspose1d#1 + eval-mode BatchNorm1d, as one fused matmul.
    a1 = jnp.dot(z_ref[...], w1_ref[...], preferred_element_type=f32) + c1_ref[...]
    a1 = jnp.maximum(a1, 0.0)                                     # ReLU (f32, VPU)
    # ConvTranspose1d#2 as one lane-dense matmul, then Tanh.
    a2 = jnp.dot(a1.astype(w2_ref.dtype), w2_ref[...],
                 preferred_element_type=f32) + c2_ref[...]
    out_ref[...] = jnp.tanh(a2)                                   # (Bt, F_pad) f32


# ---------------------------------------------------------------------------
# Small helpers (wrapper-side, plain Python / JAX glue).
# ---------------------------------------------------------------------------
def _round_up(x, m):
    return (x + m - 1) // m * m


def _cdiv(a, b):
    return -(-a // b)


def _full_spec(arr):
    nd = arr.ndim
    return pl.BlockSpec(arr.shape, lambda i, _nd=nd: (0,) * _nd)


def _convT1d_dense(w, l_in, stride, padding):
    """Exact dense matrix of ConvTranspose1d acting on (C, L)-flattened vectors.

    w: PyTorch ConvTranspose1d weight, shape (C_in, C_out, K).
    Returns (M, L_out) with M[(ci*L_in + l), (co*L_out + t)] = w[ci, co, j]
    summed over all (l, j) with t = l*stride - padding + j.
    """
    c_in, c_out, k = w.shape
    l_out = (l_in - 1) * stride - 2 * padding + k
    m4 = jnp.zeros((c_in, l_in, c_out, l_out), jnp.float32)
    for l in range(l_in):
        for j in range(k):
            t = l * stride - padding + j
            if 0 <= t < l_out:
                m4 = m4.at[:, l, :, t].add(w[:, :, j].astype(jnp.float32))
    return m4.reshape(c_in * l_in, c_out * l_out), l_out


# ---------------------------------------------------------------------------
# Wrapper: weight preprocessing + pallas_call.
# ---------------------------------------------------------------------------
def time_series_decoder(z, params, *, series_length, channels, hidden_dim=128,
                        bn_eps=1e-5, b_tile=256, use_bf16=True):
    """Forward pass of TimeSeriesDecoder.

    z: (B, latent_dim) float32.  Returns (B, channels, series_length) float32.
    params["fc_w"] must be in PyTorch nn.Linear layout (out_features, in_features).
    BatchNorm1d is applied in eval mode (folded running statistics).
    b_tile may be raised (512-1024) on v5e/v6e for large batches; keep 256 on v7x.
    """
    assert b_tile % 16 == 0
    B, latent = z.shape
    l_q = series_length // 4
    mid = hidden_dim // 2
    feat = channels * series_length

    # ---- offline weight preprocessing --------------------------------------
    m1, l_h = _convT1d_dense(params["w1"], l_q, 2, 1)        # (hid*Lq, mid*Lh)
    m2, l_out = _convT1d_dense(params["w2"], l_h, 2, 1)      # (mid*Lh, C*L)
    assert l_out == series_length and l_h == series_length // 2

    # Fold eval-mode BatchNorm1d (per mid-channel affine) into operator #1.
    s = params["bn_g"] / jnp.sqrt(params["bn_v"] + bn_eps)
    t = params["bn_b"] - s * params["bn_m"]
    s_flat = jnp.repeat(s, l_h)                              # column index = c*Lh + t
    b1_flat = jnp.repeat(params["b1"], l_h)
    m1_f = m1 * s_flat[None, :]
    c1 = (b1_flat * s_flat + jnp.repeat(t, l_h))[None, :]    # (1, mid*Lh)

    # Fuse the fc Linear (no nonlinearity in between) into operator #1:
    #   (z @ fc_w^T + fc_b) @ m1_f + c1  ==  z @ (fc_w^T @ m1_f) + (fc_b @ m1_f + c1)
    hi = lax.Precision.HIGHEST
    fc_wT = params["fc_w"].T.astype(jnp.float32)             # (latent, hid*Lq)
    w1c = jnp.dot(fc_wT, m1_f, precision=hi)                 # (latent, mid*Lh)
    c1c = jnp.dot(params["fc_b"][None, :].astype(jnp.float32), m1_f,
                  precision=hi) + c1                         # (1, mid*Lh)

    # Lane-dense output: zero-pad output feature dim up to a multiple of 128.
    feat_pad = _round_up(feat, 128)
    m2p = jnp.pad(m2, ((0, 0), (0, feat_pad - feat)))
    c2p = jnp.pad(jnp.repeat(params["b2"], series_length)[None, :].astype(jnp.float32),
                  ((0, 0), (0, feat_pad - feat)))

    mm_dtype = jnp.bfloat16 if use_bf16 else jnp.float32
    w1c = w1c.astype(mm_dtype)
    m2p = m2p.astype(mm_dtype)
    c1c = c1c.astype(jnp.float32)

    # ---- batch tiling -------------------------------------------------------
    if B <= 16:
        bt = _round_up(B, 8)          # sublane-aligned M; single grid step
    else:
        # >= 2 grid steps so ("parallel",) can shard across v7x's two TCs;
        # 16-aligned so bf16 tiles of z are also legal when blocks are partial.
        bt = min(b_tile, _round_up(_cdiv(B, 2), 16))
    b_pad = _round_up(B, bt)
    z_p = z.astype(mm_dtype)
    if b_pad != B:
        z_p = jnp.pad(z_p, ((0, b_pad - B), (0, 0)))

    # ---- explicit VMEM budget (weights resident + buffered activations) -----
    wbytes = sum(int(a.size) * a.dtype.itemsize for a in (w1c, c1c, m2p, c2p))
    abytes = bt * latent * z_p.dtype.itemsize + bt * feat_pad * 4 + bt * (mid * l_h) * 4
    vmem_limit = int(min(max(4 * (wbytes + abytes), 16 * 2**20), 64 * 2**20))

    weight_args = [w1c, c1c, m2p, c2p]
    out_flat = pl.pallas_call(
        _decoder_kernel,
        out_shape=jax.ShapeDtypeStruct((b_pad, feat_pad), jnp.float32),
        grid=(b_pad // bt,),
        in_specs=[pl.BlockSpec((bt, latent), lambda i: (i, 0))]
                 + [_full_spec(a) for a in weight_args],
        out_specs=pl.BlockSpec((bt, feat_pad), lambda i: (i, 0)),
        compiler_params=pltpu.CompilerParams(
            dimension_semantics=("parallel",),
            vmem_limit_bytes=vmem_limit),
    )(z_p, *weight_args)

    out_flat = out_flat[:B, :feat]                  # drop batch / lane padding
    return out_flat.reshape(B, channels, series_length)


# ---------------------------------------------------------------------------
# Synthetic parameters (PyTorch-style layouts) and pure-JAX reference.
# ---------------------------------------------------------------------------
def init_params(key, *, latent_dim, series_length, channels, hidden_dim=128):
    keys = jax.random.split(key, 10)
    fc_out = hidden_dim * (series_length // 4)

    def unif(k, shape, bound):
        return jax.random.uniform(k, shape, jnp.float32, -bound, bound)

    p = {}
    b = 1.0 / math.sqrt(latent_dim)
    p["fc_w"] = unif(keys[0], (fc_out, latent_dim), b)     # nn.Linear (out, in)
    p["fc_b"] = unif(keys[1], (fc_out,), b)

    k1 = 1.0 / math.sqrt(hidden_dim * 4)
    p["w1"] = unif(keys[2], (hidden_dim, hidden_dim // 2, 4), k1)  # (C_in, C_out, K)
    p["b1"] = unif(keys[3], (hidden_dim // 2,), k1)

    # BatchNorm1d (eval-mode running stats), randomized so the fold is exercised.
    p["bn_g"] = 1.0 + 0.3 * jax.random.normal(keys[4], (hidden_dim // 2,), jnp.float32)
    p["bn_b"] = 0.2 * jax.random.normal(keys[5], (hidden_dim // 2,), jnp.float32)
    p["bn_m"] = 0.1 * jax.random.normal(keys[6], (hidden_dim // 2,), jnp.float32)
    p["bn_v"] = jax.random.uniform(keys[7], (hidden_dim // 2,), jnp.float32, 0.5, 1.5)

    k2 = 1.0 / math.sqrt((hidden_dim // 2) * 4)
    p["w2"] = unif(keys[8], (hidden_dim // 2, channels, 4), k2)
    p["b2"] = unif(keys[9], (channels,), k2)
    return p


def _conv_transpose1d_ref(x, w, b, stride, padding):
    """PyTorch-equivalent ConvTranspose1d via lax dilated conv (independent path)."""
    c_in, c_out, k = w.shape
    w_oih = jnp.transpose(jnp.flip(w, axis=2), (1, 0, 2))          # (C_out, C_in, K)
    y = lax.conv_general_dilated(
        x, w_oih, window_strides=(1,),
        padding=[(k - 1 - padding, k - 1 - padding)],
        lhs_dilation=(stride,), rhs_dilation=(1,),
        dimension_numbers=("NCH", "OIH", "NCH"))
    return y + b[None, :, None]


def reference(z, params, *, series_length, channels, hidden_dim=128, bn_eps=1e-5):
    B = z.shape[0]
    l_q = series_length // 4
    h = z @ params["fc_w"].T + params["fc_b"]
    x = h.reshape(B, hidden_dim, l_q)
    x = _conv_transpose1d_ref(x, params["w1"], params["b1"], 2, 1)
    s = params["bn_g"] / jnp.sqrt(params["bn_v"] + bn_eps)
    x = (x - params["bn_m"][None, :, None]) * s[None, :, None] + params["bn_b"][None, :, None]
    x = jnp.maximum(x, 0.0)
    x = _conv_transpose1d_ref(x, params["w2"], params["b2"], 2, 1)
    return jnp.tanh(x)


if __name__ == "__main__":
    # Small shapes consistent with the module (hidden_dim is fixed at 128 by it):
    # latent_dim=32, series_length=16, channels=4, batch=2.
    B, latent_dim, series_length, channels = 2, 32, 16, 4

    key = jax.random.PRNGKey(0)
    kz, kp = jax.random.split(key)
    z = jax.random.normal(kz, (B, latent_dim), jnp.float32)
    params = init_params(kp, latent_dim=latent_dim,
                         series_length=series_length, channels=channels)

    ref = reference(z, params, series_length=series_length, channels=channels)

    # (1) f32 matmul path: tighter tolerance validates the operator
    #     densification, BatchNorm fold and fc fusion (indexing bugs => O(0.1) err).
    out_f32 = jax.block_until_ready(time_series_decoder(
        z, params, series_length=series_length, channels=channels, use_bf16=False))
    assert out_f32.shape == (B, channels, series_length)
    assert bool(jnp.all(jnp.isfinite(out_f32)))
    err_f32 = float(jnp.max(jnp.abs(out_f32 - ref)))
    assert err_f32 < 1e-2, f"f32-path max abs err {err_f32}"

    # (2) bf16 matmul path (default fast path): looser tolerance for the cast.
    out = jax.block_until_ready(time_series_decoder(
        z, params, series_length=series_length, channels=channels, use_bf16=True))
    assert out.shape == (B, channels, series_length)
    assert bool(jnp.all(jnp.isfinite(out)))
    err_bf16 = float(jnp.max(jnp.abs(out - ref)))
    assert err_bf16 < 2e-2, f"bf16-path max abs err {err_bf16}"

    print("KERNEL_OK")
</pallas_src>

<mosaic_0001>
module attributes {stable_mosaic.version = 11 : i64} {
  func.func @_decoder_kernel(%arg0: i32, %arg1: memref<8x32xf32, #tpu.memory_space<vmem>>, %arg2: memref<32x512xf32, #tpu.memory_space<vmem>>, %arg3: memref<1x512xf32, #tpu.memory_space<vmem>>, %arg4: memref<512x128xf32, #tpu.memory_space<vmem>>, %arg5: memref<1x128xf32, #tpu.memory_space<vmem>>, %arg6: memref<8x128xf32, #tpu.memory_space<vmem>>) attributes {dimension_semantics = [#tpu.dimension_semantics<parallel>], iteration_bounds = array<i64: 1>, scalar_prefetch = 0 : i64, scratch_operands = 0 : i64, tpu.core_type = #tpu.core_type<tc>, window_params = [{transform_indices = @transform_0, window_bounds = array<i64: 8, 32>}, {pipeline_mode = #tpu.pipeline_mode<synchronous>, transform_indices = @transform_1, window_bounds = array<i64: 32, 512>}, {pipeline_mode = #tpu.pipeline_mode<synchronous>, transform_indices = @transform_2, window_bounds = array<i64: 1, 512>}, {pipeline_mode = #tpu.pipeline_mode<synchronous>, transform_indices = @transform_3, window_bounds = array<i64: 512, 128>}, {pipeline_mode = #tpu.pipeline_mode<synchronous>, transform_indices = @transform_4, window_bounds = array<i64: 1, 128>}, {transform_indices = @transform_5, window_bounds = array<i64: 8, 128>}]} {
    %c0 = arith.constant 0 : index
    %c0_0 = arith.constant 0 : index
    %0 = vector.load %arg1[%c0, %c0_0] : memref<8x32xf32, #tpu.memory_space<vmem>>, vector<8x32xf32>
    %c0_1 = arith.constant 0 : index
    %c0_2 = arith.constant 0 : index
    %1 = vector.load %arg2[%c0_1, %c0_2] : memref<32x512xf32, #tpu.memory_space<vmem>>, vector<32x512xf32>
    %cst = arith.constant dense<0.000000e+00> : vector<8x512xf32>
    %2 = tpu.matmul %0, %1, %cst {dimension_numbers = #tpu.dot_dimension_numbers<[1], [0], [0], [1], [0, 0, 1, 1], [], []>} : vector<8x32xf32>, vector<32x512xf32>, vector<8x512xf32> -> vector<8x512xf32>
    %c0_3 = arith.constant 0 : index
    %c0_4 = arith.constant 0 : index
    %3 = vector.load %arg3[%c0_3, %c0_4] : memref<1x512xf32, #tpu.memory_space<vmem>>, vector<1x512xf32>
    %4 = vector.broadcast %3 : vector<1x512xf32> to vector<8x512xf32>
    %5 = arith.addf %2, %4 : vector<8x512xf32>
    %cst_5 = arith.constant 0.000000e+00 : f32
    %6 = vector.broadcast %cst_5 : f32 to vector<8x512xf32>
    %7 = arith.maximumf %5, %6 : vector<8x512xf32>
    %c0_6 = arith.constant 0 : index
    %c0_7 = arith.constant 0 : index
    %8 = vector.load %arg4[%c0_6, %c0_7] : memref<512x128xf32, #tpu.memory_space<vmem>>, vector<512x128xf32>
    %cst_8 = arith.constant dense<0.000000e+00> : vector<8x128xf32>
    %9 = tpu.matmul %7, %8, %cst_8 {dimension_numbers = #tpu.dot_dimension_numbers<[1], [0], [0], [1], [0, 0, 1, 1], [], []>} : vector<8x512xf32>, vector<512x128xf32>, vector<8x128xf32> -> vector<8x128xf32>
    %c0_9 = arith.constant 0 : index
    %c0_10 = arith.constant 0 : index
    %10 = vector.load %arg5[%c0_9, %c0_10] : memref<1x128xf32, #tpu.memory_space<vmem>>, vector<1x128xf32>
    %11 = vector.broadcast %10 : vector<1x128xf32> to vector<8x128xf32>
    %12 = arith.addf %9, %11 : vector<8x128xf32>
    %13 = math.tanh %12 : vector<8x128xf32>
    %c0_11 = arith.constant 0 : index
    %c0_12 = arith.constant 0 : index
    %14 = vector.load %arg6[%c0_11, %c0_12] : memref<8x128xf32, #tpu.memory_space<vmem>>, vector<8x128xf32>
    tpu.vector_store %arg6[%c0_11, %c0_12], %13 {strides = array<i32>} : memref<8x128xf32, #tpu.memory_space<vmem>>, vector<8x128xf32>,
    return
  }
  func.func @transform_0(%arg0: i32) -> (i32, i32) {
    %c0_i32 = arith.constant 0 : i32
    %c0_i32_0 = arith.constant 0 : i32
    return %arg0, %c0_i32 : i32, i32
  }
  func.func @transform_1(%arg0: i32) -> (i32, i32) {
    %c0_i32 = arith.constant 0 : i32
    %c0_i32_0 = arith.constant 0 : i32
    %c0_i32_1 = arith.constant 0 : i32
    return %c0_i32, %c0_i32_0 : i32, i32
  }
  func.func @transform_2(%arg0: i32) -> (i32, i32) {
    %c0_i32 = arith.constant 0 : i32
    %c0_i32_0 = arith.constant 0 : i32
    %c0_i32_1 = arith.constant 0 : i32
    return %c0_i32, %c0_i32_0 : i32, i32
  }
  func.func @transform_3(%arg0: i32) -> (i32, i32) {
    %c0_i32 = arith.constant 0 : i32
    %c0_i32_0 = arith.constant 0 : i32
    %c0_i32_1 = arith.constant 0 : i32
    return %c0_i32, %c0_i32_0 : i32, i32
  }
  func.func @transform_4(%arg0: i32) -> (i32, i32) {
    %c0_i32 = arith.constant 0 : i32
    %c0_i32_0 = arith.constant 0 : i32
    %c0_i32_1 = arith.constant 0 : i32
    return %c0_i32, %c0_i32_0 : i32, i32
  }
  func.func @transform_5(%arg0: i32) -> (i32, i32) {
    %c0_i32 = arith.constant 0 : i32
    %c0_i32_0 = arith.constant 0 : i32
    return %arg0, %c0_i32 : i32, i32
  }
}

</mosaic_0001>

<bundles_post_ra>
// kernel: tpu_custom_call.1
= control target key start
LH: loop header
LB: loop body
LE: loop exit
PB: predicated region body
PF: predicated region fallthrough
CT: control target
= control target key end

     0   :  { %10 = vsyncpa [#allocation3], 0  ;;  %s569_s0 = inlined_call_operand.hbm [shape: f32[8,32], index: 0, kind: input, shape index: {}]   ;;  %s570_s1 = inlined_call_operand.hbm [shape: f32[32,512], index: 1, kind: input, shape index: {}]   ;;  %s571_s2 = inlined_call_operand.hbm [shape: f32[1,512], index: 2, kind: input, shape index: {}]   ;;  %s572_s3 = inlined_call_operand.hbm [shape: f32[512,128], index: 3, kind: input, shape index: {}]   ;;  %s573_s4 = inlined_call_operand.vmem [shape: f32[1,128], index: 4, kind: input, shape index: {}]   ;;  %s574_s5 = inlined_call_operand.hbm [shape: f32[8,128], index: 5, kind: output, shape index: {}]  }
   0x1   :  { %11 = vsyncpa [#allocation6], 0 }
   0x2   :  { %12 = vsyncpa [#allocation9], 0  ;;  %s29_s20 = sshll.u32 %s570_s1, 4  ;;  %s30_s20 = int_to_ptr.hbm [resolvable:$true] %s29_s20 }
   0x3   :  { %13 = vsyncpa [#allocation4], 0  ;;  %s508_s21 = smov [#allocation5]   ;;  %s19_s25 = sshll.u32 %s569_s0, 4  ;;  %s20_s25 = int_to_ptr.hbm [resolvable:$true] %s19_s25 }
   0x4   :  { %s31_s22 = sshll.u32 %s508_s21, 4  ;;  %s509_s26 = smov 512   ;;  %s32_s22 = int_to_ptr.vmem [resolvable:$true] %s31_s22 }
   0x5   :  { %s510_s27 = smov 32   ;;  %s511_s28 = smov [#allocation2]  }
   0x6   :  { %37 = dma.hbm_to_vmem [thread:$0]  %s30_s20, 2048, %s32_s22, [#allocation6], %s509_s26, %s509_s26, %s510_s27  }
   0x7   :  { %s21_s29 = sshll.u32 %s511_s28, 4  ;;  %s43_s7 = sshll.u32 %s571_s2, 4  ;;  %s22_s29 = int_to_ptr.vmem [resolvable:$true] %s21_s29  ;;  %s44_s7 = int_to_ptr.hbm [resolvable:$true] %s43_s7 }
   0x8   :  { %24 = dma.hbm_to_vmem [thread:$0]  %s20_s25, 128, %s22_s29, [#allocation3]  }
   0x9   :  { %s53_s9 = sshll.u32 %s572_s3, 4  ;;  %s512_s10 = smov [#allocation7]   ;;  %s54_s9 = int_to_ptr.hbm [resolvable:$true] %s53_s9 }
   0xa   :  { %s45_s11 = sshll.u32 %s512_s10, 4  ;;  %s513_s0 = smov [#allocation8]   ;;  %s46_s11 = int_to_ptr.vmem [resolvable:$true] %s45_s11 }
   0xb   :  { %48 = dma.hbm_to_vmem [thread:$0]  %s44_s7, 64, %s46_s11, [#allocation6]  }
   0xc   :  { %s55_s12 = sshll.u32 %s513_s0, 4  ;;  %s514_s13 = smov 128   ;;  %s56_s12 = int_to_ptr.vmem [resolvable:$true] %s55_s12 }
   0xd   :  { %s515_s14 = smov 8  }
   0xe   :  { %61 = dma.hbm_to_vmem [thread:$0]  %s54_s9, 8192, %s56_s12, [#allocation9], %s514_s13, %s514_s13, %s515_s14  }
   0xf   :  { %500 = dma.done.wait [#allocation3], 128  }
  0x10   :  { %501 = vsyncadd [#allocation3], 4294967168 }
  0x11   :  { %502 = dma.done.wait [#allocation6], 2112  }
  0x12   :  { %503 = vsyncadd [#allocation6], 4294965184 }
  0x13   :  { %504 = dma.done.wait [#allocation9], 8192  }
  0x14   :  { %505 = vsyncadd [#allocation9], 4294959104  ;;  %v95_v0 = vld [vmem:[#allocation5 + $0x70] sm:$0xff]  ;;  %v96_v2 = vld [vmem:[#allocation5 + $0x78] sm:$0xff]  ;;  %vm107_vm0 = vcmask 261120   ;;  %s516_s15 = smov [#allocation10]  }
  0x15   :  { %v91_v1 = vld [vmem:[#allocation5 + $0x50] sm:$0xff]  ;;  %163 = vmatpush.msra.mxu2 %v95_v0  ;;  %183 = vmatpush.msra.mxu3 %v96_v2  ;;  %v92_v3 = vld [vmem:[#allocation5 + $0x58] sm:$0xff]  ;;  %v93_v6 = vld [vmem:[#allocation5 + $0x60] sm:$0xff]  ;;  %s350_s16 = sshll.u32 %s516_s15, 4  ;;  %s352_s19 = sshll.u32 %s574_s5, 4  ;;  %s351_s16 = int_to_ptr.vmem [resolvable:$true] %s350_s16  ;;  %s353_s19 = int_to_ptr.hbm [resolvable:$true] %s352_s19 }
  0x16   :  { %v87_v4 = vld [vmem:[#allocation5 + $0x30] sm:$0xff]  ;;  %v88_v5 = vld [vmem:[#allocation5 + $0x38] sm:$0xff]  ;;  %v89_v7 = vld [vmem:[#allocation5 + $0x40] sm:$0xff]  ;;  %123 = vmatpush.msra.mxu0 %v93_v6 }
  0x17   :  { %164 = vmatpush.msra.mxu2 %v91_v1  ;;  %184 = vmatpush.msra.mxu3 %v92_v3  ;;  %v94_v8 = vld [vmem:[#allocation5 + $0x68] sm:$0xff]  ;;  %v83_v9 = vld [vmem:[#allocation5 + $0x10] sm:$0xff]  ;;  %v84_v10 = vld [vmem:[#allocation5 + $0x18] sm:$0xff] }
  0x18   :  { %143 = vmatpush.msra.mxu1 %v94_v8  ;;  %v90_v11 = vld [vmem:[#allocation5 + $0x48] sm:$0xff]  ;;  %v80_v12 = vld [vmem:[#allocation2] sm:$0xff]  ;;  %124 = vmatpush.msra.mxu0 %v89_v7  ;;  %v85_v13 = vld [vmem:[#allocation5 + $0x20] sm:$0xff] }
  0x19   :  { %165 = vmatpush.msra.mxu2 %v87_v4  ;;  %185 = vmatpush.msra.mxu3 %v88_v5  ;;  %v86_v14 = vld [vmem:[#allocation5 + $0x28] sm:$0xff]  ;;  %v242_v15 = vld [vmem:[#allocation8 + $0x178] sm:$0xff]  ;;  %v241_v20 = vld [vmem:[#allocation8 + $0x170] sm:$0xff] }
  0x1a   :  { %144 = vmatpush.msra.mxu1 %v90_v11  ;;  %v258_v16 = vld [vmem:[#allocation8 + $0x1f8] sm:$0xff]  ;;  %v82_v18 = vld [vmem:[#allocation5 + $0x8] sm:$0xff]  ;;  %125 = vmatpush.msra.mxu0 %v85_v13  ;;  %v257_v22 = vld [vmem:[#allocation8 + $0x1f0] sm:$0xff] }
  0x1b   :  { %166 = vmatpush.msra.mxu2 %v83_v9  ;;  %186 = vmatpush.msra.mxu3 %v84_v10  ;;  %v81_v17 = vld [vmem:[#allocation5] sm:$0xff]  ;;  %v209_v23 = vld [vmem:[#allocation8 + $0x70] sm:$0xff]  ;;  %v240_v24 = vld [vmem:[#allocation8 + $0x168] sm:$0xff] }
  0x1c   :  { %366 = vmatmul.msk.f32.vlgmr.msra.gmra.mxu2 %vm107_vm0, %v80_v12  ;;  %367 = vmatmul.msk.f32.vlgmr.msra.gmra.mxu3 %vm107_vm0, %v80_v12  ;;  %v210_v19 = vld [vmem:[#allocation8 + $0x78] sm:$0xff]  ;;  %v225_v25 = vld [vmem:[#allocation8 + $0xf0] sm:$0xff]  ;;  %v256_v26 = vld [vmem:[#allocation8 + $0x1e8] sm:$0xff] }
  0x1d   :  { %145 = vmatpush.msra.mxu1 %v86_v14  ;;  %303 = vmatpush.msrb.mxu2 %v242_v15  ;;  %v226_v21 = vld [vmem:[#allocation8 + $0xf8] sm:$0xff]  ;;  %v208_v27 = vld [vmem:[#allocation8 + $0x68] sm:$0xff]  ;;  %v239_v28 = vld [vmem:[#allocation8 + $0x160] sm:$0xff] }
  0x1e   :  { %323 = vmatpush.msrb.mxu3 %v258_v16  ;;  %126 = vmatpush.msra.mxu0 %v81_v17  ;;  %v224_v29 = vld [vmem:[#allocation8 + $0xe8] sm:$0xff]  ;;  %v255_v30 = vld [vmem:[#allocation8 + $0x1e0] sm:$0xff]  ;;  %v238_v32 = vld [vmem:[#allocation8 + $0x158] sm:$0xff] }
  0x1f   :  { %146 = vmatpush.msra.mxu1 %v82_v18  ;;  %364 = vmatmul.msk.f32.vlgmr.msra.gmra.mxu0 %vm107_vm0, %v80_v12  ;;  %v207_v31 = vld [vmem:[#allocation8 + $0x60] sm:$0xff]  ;;  %v254_v34 = vld [vmem:[#allocation8 + $0x1d8] sm:$0xff]  ;;  %v237_v36 = vld [vmem:[#allocation8 + $0x150] sm:$0xff] }
  0x20   :  { %365 = vmatmul.msk.f32.vlgmr.msra.gmra.mxu1 %vm107_vm0, %v80_v12  ;;  %263 = vmatpush.msrb.mxu0 %v210_v19  ;;  %v223_v33 = vld [vmem:[#allocation8 + $0xe0] sm:$0xff]  ;;  %v206_v35 = vld [vmem:[#allocation8 + $0x58] sm:$0xff]  ;;  %v253_v38 = vld [vmem:[#allocation8 + $0x1d0] sm:$0xff] }
  0x21   :  { %304 = vmatpush.msrb.mxu2 %v241_v20  ;;  %283 = vmatpush.msrb.mxu1 %v226_v21  ;;  %v222_v37 = vld [vmem:[#allocation8 + $0xd8] sm:$0xff]  ;;  %v205_v39 = vld [vmem:[#allocation8 + $0x50] sm:$0xff]  ;;  %v236_v40 = vld [vmem:[#allocation8 + $0x148] sm:$0xff] }
  0x22   :  { %324 = vmatpush.msrb.mxu3 %v257_v22  ;;  %264 = vmatpush.msrb.mxu0 %v209_v23  ;;  %v221_v41 = vld [vmem:[#allocation8 + $0xd0] sm:$0xff]  ;;  %v252_v42 = vld [vmem:[#allocation8 + $0x1c8] sm:$0xff]  ;;  %v235_v44 = vld [vmem:[#allocation8 + $0x140] sm:$0xff] }
  0x23   :  { %305 = vmatpush.msrb.mxu2 %v240_v24  ;;  %284 = vmatpush.msrb.mxu1 %v225_v25  ;;  %v204_v43 = vld [vmem:[#allocation8 + $0x48] sm:$0xff]  ;;  %v251_v46 = vld [vmem:[#allocation8 + $0x1c0] sm:$0xff]  ;;  %v234_v48 = vld [vmem:[#allocation8 + $0x138] sm:$0xff] }
  0x24   :  { %325 = vmatpush.msrb.mxu3 %v256_v26  ;;  %265 = vmatpush.msrb.mxu0 %v208_v27  ;;  %v220_v45 = vld [vmem:[#allocation8 + $0xc8] sm:$0xff]  ;;  %v203_v47 = vld [vmem:[#allocation8 + $0x40] sm:$0xff]  ;;  %v250_v50 = vld [vmem:[#allocation8 + $0x1b8] sm:$0xff] }
  0x25   :  { %306 = vmatpush.msrb.mxu2 %v239_v28  ;;  %285 = vmatpush.msrb.mxu1 %v224_v29  ;;  %v219_v49 = vld [vmem:[#allocation8 + $0xc0] sm:$0xff]  ;;  %v202_v51 = vld [vmem:[#allocation8 + $0x38] sm:$0xff]  ;;  %v233_v52 = vld [vmem:[#allocation8 + $0x130] sm:$0xff] }
  0x26   :  { %326 = vmatpush.msrb.mxu3 %v255_v30  ;;  %266 = vmatpush.msrb.mxu0 %v207_v31  ;;  %v218_v53 = vld [vmem:[#allocation8 + $0xb8] sm:$0xff]  ;;  %v249_v54 = vld [vmem:[#allocation8 + $0x1b0] sm:$0xff]  ;;  %v232_v56 = vld [vmem:[#allocation8 + $0x128] sm:$0xff] }
  0x27   :  { %307 = vmatpush.msrb.mxu2 %v238_v32  ;;  %286 = vmatpush.msrb.mxu1 %v223_v33  ;;  %v201_v55 = vld [vmem:[#allocation8 + $0x30] sm:$0xff]  ;;  %v248_v58 = vld [vmem:[#allocation8 + $0x1a8] sm:$0xff]  ;;  %v231_v60 = vld [vmem:[#allocation8 + $0x120] sm:$0xff] }
  0x28   :  { %327 = vmatpush.msrb.mxu3 %v254_v34  ;;  %267 = vmatpush.msrb.mxu0 %v206_v35  ;;  %v217_v57 = vld [vmem:[#allocation8 + $0xb0] sm:$0xff]  ;;  %v200_v59 = vld [vmem:[#allocation8 + $0x28] sm:$0xff]  ;;  %v247_v62 = vld [vmem:[#allocation8 + $0x1a0] sm:$0xff] }
  0x29   :  { %308 = vmatpush.msrb.mxu2 %v237_v36  ;;  %287 = vmatpush.msrb.mxu1 %v222_v37  ;;  %v216_v61 = vld [vmem:[#allocation8 + $0xa8] sm:$0xff]  ;;  %v199_v63 = vld [vmem:[#allocation8 + $0x20] sm:$0xff]  ;;  %v230_v0 = vld [vmem:[#allocation8 + $0x118] sm:$0xff] }
  0x2a   :  { %328 = vmatpush.msrb.mxu3 %v253_v38  ;;  %268 = vmatpush.msrb.mxu0 %v205_v39  ;;  %v198_v1 = vld [vmem:[#allocation8 + $0x18] sm:$0xff]  ;;  %v215_v2 = vld [vmem:[#allocation8 + $0xa0] sm:$0xff]  ;;  %v229_v3 = vld [vmem:[#allocation8 + $0x110] sm:$0xff] }
  0x2b   :  { %309 = vmatpush.msrb.mxu2 %v236_v40  ;;  %288 = vmatpush.msrb.mxu1 %v221_v41  ;;  %v246_v4 = vld [vmem:[#allocation8 + $0x198] sm:$0xff]  ;;  %v197_v5 = vld [vmem:[#allocation8 + $0x10] sm:$0xff]  ;;  %v228_v7 = vld [vmem:[#allocation8 + $0x108] sm:$0xff] }
  0x2c   :  { %329 = vmatpush.msrb.mxu3 %v252_v42  ;;  %269 = vmatpush.msrb.mxu0 %v204_v43  ;;  %v214_v6 = vld [vmem:[#allocation8 + $0x98] sm:$0xff]  ;;  %v245_v8 = vld [vmem:[#allocation8 + $0x190] sm:$0xff]  ;;  %v196_v9 = vld [vmem:[#allocation8 + $0x8] sm:$0xff] }
  0x2d   :  { %310 = vmatpush.msrb.mxu2 %v235_v44  ;;  %289 = vmatpush.msrb.mxu1 %v220_v45  ;;  %v213_v10 = vld [vmem:[#allocation8 + $0x90] sm:$0xff]  ;;  %v227_v11 = vld [vmem:[#allocation8 + $0x100] sm:$0xff]  ;;  %v244_v12 = vld [vmem:[#allocation8 + $0x188] sm:$0xff] }
  0x2e   :  { %330 = vmatpush.msrb.mxu3 %v251_v46  ;;  %270 = vmatpush.msrb.mxu0 %v203_v47  ;;  %v195_v13 = vld [vmem:[#allocation8] sm:$0xff]  ;;  %v212_v14 = vld [vmem:[#allocation8 + $0x88] sm:$0xff]  ;;  %v97_v17 = vld [vmem:[#allocation7] sm:$0xf] }
  0x2f   :  { %311 = vmatpush.msrb.mxu2 %v234_v48  ;;  %290 = vmatpush.msrb.mxu1 %v219_v49  ;;  %v243_v15 = vld [vmem:[#allocation8 + $0x180] sm:$0xff]  ;;  %v99_v18 = vperm.slane %v97_v17, 0  ;;  %v100_v19 = vperm.slane %v97_v17, 1  ;;  %v101_v20 = vperm.slane %v97_v17, 2  ;;  %v102_v21 = vperm.slane %v97_v17, 3 }
  0x30   :  { %331 = vmatpush.msrb.mxu3 %v250_v50  ;;  %271 = vmatpush.msrb.mxu0 %v202_v51  ;;  %v211_v16 = vld [vmem:[#allocation8 + $0x80] sm:$0xff]  ;;  %v377_v34 = vld [vmem:[%s573_s4] ss:$0 sm:$0xff] }
  0x31   :  { %312 = vmatpush.msrb.mxu2 %v233_v52  ;;  %291 = vmatpush.msrb.mxu1 %v218_v53 }
  0x32   :  { %332 = vmatpush.msrb.mxu3 %v249_v54  ;;  %272 = vmatpush.msrb.mxu0 %v201_v55 }
  0x33   :  { %313 = vmatpush.msrb.mxu2 %v232_v56  ;;  %292 = vmatpush.msrb.mxu1 %v217_v57 }
  0x34   :  { %333 = vmatpush.msrb.mxu3 %v248_v58  ;;  %273 = vmatpush.msrb.mxu0 %v200_v59 }
  0x35   :  { %314 = vmatpush.msrb.mxu2 %v231_v60  ;;  %293 = vmatpush.msrb.mxu1 %v216_v61 }
  0x36   :  { %334 = vmatpush.msrb.mxu3 %v247_v62  ;;  %274 = vmatpush.msrb.mxu0 %v199_v63 }
  0x37   :  { %315 = vmatpush.msrb.mxu2 %v230_v0  ;;  %294 = vmatpush.msrb.mxu1 %v215_v2 }
  0x38   :  { %275 = vmatpush.msrb.mxu0 %v198_v1  ;;  %335 = vmatpush.msrb.mxu3 %v246_v4 }
  0x39   :  { %316 = vmatpush.msrb.mxu2 %v229_v3  ;;  %295 = vmatpush.msrb.mxu1 %v214_v6 }
  0x3a   :  { %276 = vmatpush.msrb.mxu0 %v197_v5  ;;  %336 = vmatpush.msrb.mxu3 %v245_v8 }
  0x3b   :  { %317 = vmatpush.msrb.mxu2 %v228_v7  ;;  %296 = vmatpush.msrb.mxu1 %v213_v10 }
  0x3c   :  { %277 = vmatpush.msrb.mxu0 %v196_v9  ;;  %337 = vmatpush.msrb.mxu3 %v244_v12 }
  0x3d   :  { %318 = vmatpush.msrb.mxu2 %v227_v11  ;;  %297 = vmatpush.msrb.mxu1 %v212_v14 }
  0x3e   :  { %278 = vmatpush.msrb.mxu0 %v195_v13  ;;  %338 = vmatpush.msrb.mxu3 %v243_v15 }
  0x3f   :  { %298 = vmatpush.msrb.mxu1 %v211_v16 }
  0x9c   :  { %v128_v22 = vpop.f32.mrf.mxu0 }
  0x9d   :  { %v148_v23 = vpop.f32.mrf.mxu1  ;;  %v129_v24 = vadd.f32 %v128_v22, %v99_v18 }
  0x9e   :  { %v149_v25 = vadd.f32 %v148_v23, %v100_v19 }
  0x9f   :  { %v168_v26 = vpop.f32.mrf.mxu2  ;;  %v188_v27 = vpop.f32.mrf.mxu3  ;;  %v191_v29 = vmax.f32 %v129_v24, 0.0 }
  0xa0   :  { %v169_v28 = vadd.f32 %v168_v26, %v101_v20  ;;  %v189_v30 = vadd.f32 %v188_v27, %v102_v21  ;;  %v192_v31 = vmax.f32 %v149_v25, 0.0 }
  0xa1   :  { %279 = vmatmul.f32.vlgmr.msrb.gmra.mxu0 %v191_v29 }
  0xa2   :  { %v193_v32 = vmax.f32 %v169_v28, 0.0  ;;  %v194_v33 = vmax.f32 %v189_v30, 0.0  ;;  %299 = vmatmul.f32.vlgmr.msrb.gmra.mxu1 %v192_v31 }
  0xa4   :  { %319 = vmatmul.f32.vlgmr.msrb.gmra.mxu2 %v193_v32  ;;  %339 = vmatmul.f32.vlgmr.msrb.gmra.mxu3 %v194_v33 }
 0x11e   :  { %v280_v35 = vpop.f32.mrf.mxu0 }
 0x11f   :  { %v281_v36 = vadd.f32 %v377_v34, %v280_v35  ;;  %v300_v37 = vpop.f32.mrf.mxu1 }
 0x121   :  { %v301_v38 = vadd.f32 %v300_v37, %v281_v36 }
 0x127   :  { %v320_v39 = vpop.f32.mrf.mxu2  ;;  %v340_v40 = vpop.f32.mrf.mxu3 }
 0x128   :  { %v321_v41 = vadd.f32 %v320_v39, %v301_v38 }
 0x12a   :  { %v341_v42 = vadd.f32 %v340_v40, %v321_v41 }
 0x12c   :  { %378 = vtanh.f32 %v341_v42 }
 0x132   :  { %v379_v43 = vpop.eup %378 }
 0x133   :  { %344 = vst [vmem:[#allocation10] sm:$0xff] %v379_v43 }
 0x134   :  { %355 = dma.vmem_to_hbm [thread:$0]  %s351_s16, 128, %s353_s19, [#allocation4]  }
 0x135   :  { %506 = dma.done.wait [#allocation4], 128  }
 0x136   :  { %507 = vsyncadd [#allocation4], 4294967168 }
 0x137   :  { %360 = vsyncpa [#allocation3], 1 }
 0x138   :  { %361 = vsyncpa [#allocation6], 1 }
 0x139   :  { %362 = vsyncpa [#allocation9], 1 }
 0x13a   :  { %363 = vsyncpa [#allocation4], 1 }

</bundles_post_ra>
